<compile_context>
chip_gen: v7x
topology: tpu7x:2x2x1
jax: 0.10.0
libtpu: 0.0.40
codegen_flags: <defaults>
</compile_context>

<pallas_src>
import functools

import jax
import jax.numpy as jnp
from jax.experimental import pallas as pl
from jax.experimental.pallas import tpu as pltpu


def _round_up(x, m):
    return ((x + m - 1) // m) * m


def _gemm_bias_kernel(x_ref, w_ref, b_ref, o_ref):
    # x_ref : (tm, Kpad)     compute dtype (bf16 or f32) im2col rows
    # w_ref : (Kpad, Coutp)  compute dtype, pool-folded + padded conv weights
    # b_ref : (1, Coutp)     f32 bias
    # o_ref : (tm, Coutp)    lane-dense output slab
    acc = jnp.dot(x_ref[...], w_ref[...], preferred_element_type=jnp.float32)
    o_ref[...] = (acc + b_ref[...]).astype(o_ref.dtype)


def mean_pool_conv(x_nchw, weight, bias, *, stride=1, padding=1,
                   compute_dtype=jnp.bfloat16, m_block=None):
    """AvgPool2d(2) followed by Conv2d(weight, bias, stride, padding).

    x_nchw : (N, Cin, H, W)      (PyTorch NCHW)
    weight : (Cout, Cin, KH, KW) (PyTorch OIHW)
    bias   : (Cout,)
    returns: (N, Cout, Ho, Wo) in NCHW
    """
    # TODO(synk): only stride=1 convs are implemented in the kernel hot path.
    assert stride == 1, "kernel implements the stride=1 case"
    N, Cin, H, W = x_nchw.shape
    Cout, _, KH, KW = weight.shape
    assert H % 2 == 0 and W % 2 == 0
    Hp, Wp = H // 2, W // 2
    Hpp, Wpp = Hp + 2 * padding, Wp + 2 * padding
    Ho, Wo = Hpp - KH + 1, Wpp - KW + 1
    Cin2 = 2 * Cin
    K = KH * KW * 2 * Cin2                   # folded contraction depth (144 here)
    Kpad = _round_up(K, 128)                 # lane-aligned MXU contraction (256)
    # Lane-dense output channels.  (On v6e/v7x with real Cout >= 128, rounding
    # to 256 instead fills the 256-wide MXU; 128 is right for Cout=8.)
    Coutp = _round_up(max(Cout, 128), 128)

    # ---- im2col in the wrapper (layout only, no arithmetic) --------------
    # pad-before-pool is exact: 2*padding original pixels = whole zero windows.
    x = jnp.transpose(x_nchw, (0, 2, 3, 1))                                # NHWC
    xp = jnp.pad(x, ((0, 0), (2 * padding,) * 2, (2 * padding,) * 2, (0, 0)))
    xpr = xp.reshape(N, Hpp, 2, Wpp, Cin2)      # [n, i, dh, j, dw*Cin+c] free view
    cols = []
    for kh in range(KH):                        # flatten taps into the K axis,
        for kw in range(KW):                    # order (kh, kw, dh, dw, c)
            for dh in range(2):
                cols.append(xpr[:, kh:kh + Ho, dh, kw:kw + Wo, :])  # (N,Ho,Wo,Cin2)
    M = N * Ho * Wo
    lhs = jnp.concatenate(cols, axis=-1).reshape(M, K)

    # ---- M tiling: pack batch images + row-tile in one grid axis ---------
    if m_block is None:
        if M <= 1024:
            # keep >= 2 grid steps so v7x's two TensorCores both get work
            m_block = max(8, _round_up(pl.cdiv(M, 2), 8))
        else:
            m_block = 512                       # VMEM-safe row tile for big maps
    Mpad = _round_up(M, m_block)
    lhs = jnp.pad(lhs, ((0, Mpad - M), (0, Kpad - K))).astype(compute_dtype)

    # ---- fold the 2x2 mean into ONE contiguous (Kpad, Coutp) RHS tile ----
    w = jnp.transpose(weight, (2, 3, 1, 0)).astype(jnp.float32)            # (KH,KW,Cin,Cout)
    w_fold = 0.25 * jnp.broadcast_to(
        w[:, :, None, None, :, :], (KH, KW, 2, 2, Cin, Cout))              # (kh,kw,dh,dw,c,o)
    w_fold = w_fold.reshape(K, Cout)
    w_fold = jnp.pad(w_fold, ((0, Kpad - K), (0, Coutp - Cout))).astype(compute_dtype)
    b_pad = jnp.pad(bias.astype(jnp.float32), (0, Coutp - Cout)).reshape(1, Coutp)

    out = pl.pallas_call(
        _gemm_bias_kernel,
        out_shape=jax.ShapeDtypeStruct((Mpad, Coutp), x_nchw.dtype),
        grid_spec=pltpu.PrefetchScalarGridSpec(
            num_scalar_prefetch=0,
            grid=(Mpad // m_block,),
            in_specs=[
                pl.BlockSpec((m_block, Kpad), lambda m: (m, 0)),
                pl.BlockSpec((Kpad, Coutp), lambda m: (0, 0)),
                pl.BlockSpec((1, Coutp), lambda m: (0, 0)),
            ],
            out_specs=pl.BlockSpec((m_block, Coutp), lambda m: (m, 0)),
        ),
        compiler_params=pltpu.CompilerParams(
            dimension_semantics=("parallel",)),
    )(lhs, w_fold, b_pad)

    out = out[:M, :Cout].reshape(N, Ho, Wo, Cout)     # drop M/lane padding
    # TODO(synk): keep NHWC across layers to drop this transpose (and the
    #             leading NCHW->NHWC one) when the consumer allows it.
    return jnp.transpose(out, (0, 3, 1, 2))           # back to NCHW


if __name__ == "__main__":
    # MeanPoolConv(in_channels=4, out_channels=8, kernel_size=3, stride=1,
    #              padding=1, bias=True, mc_dropout=0.0)
    # TODO(synk): mc_dropout > 0 (nn.Dropout at train time) not implemented;
    #             with mc_dropout=0.0 the forward pass is exact.
    N, Cin, H, W = 2, 4, 16, 16
    Cout, Ksz, stride, padding = 8, 3, 1, 1

    key = jax.random.PRNGKey(0)
    kx, kw_, kb = jax.random.split(key, 3)
    x = jax.random.normal(kx, (N, Cin, H, W), jnp.float32)
    fan_in = Cin * Ksz * Ksz
    bound = 1.0 / (fan_in ** 0.5)                 # PyTorch Conv2d default init range
    weight = jax.random.uniform(kw_, (Cout, Cin, Ksz, Ksz), jnp.float32, -bound, bound)
    bias = jax.random.uniform(kb, (Cout,), jnp.float32, -bound, bound)

    # Plain-JAX reference: AvgPool2d(2) then Conv2d.
    pooled = x.reshape(N, Cin, H // 2, 2, W // 2, 2).mean(axis=(3, 5))
    ref = jax.lax.conv_general_dilated(
        pooled, weight, (stride, stride),
        ((padding, padding), (padding, padding)),
        dimension_numbers=("NCHW", "OIHW", "NCHW"))
    ref = ref + bias[None, :, None, None]

    # Exact path (f32 operands) — tight tolerance.
    out32 = mean_pool_conv(x, weight, bias, stride=stride, padding=padding,
                           compute_dtype=jnp.float32)
    out32 = jax.block_until_ready(out32)
    assert out32.shape == (N, Cout, H // 2, W // 2), out32.shape
    assert jnp.allclose(out32, ref, atol=1e-4, rtol=1e-4), float(
        jnp.max(jnp.abs(out32 - ref)))

    # Fast path (bf16 operands, f32 MXU accumulation) — default.
    out_bf = mean_pool_conv(x, weight, bias, stride=stride, padding=padding)
    out_bf = jax.block_until_ready(out_bf)
    assert out_bf.shape == (N, Cout, H // 2, W // 2), out_bf.shape
    assert jnp.allclose(out_bf, ref, atol=3e-2, rtol=3e-2), float(
        jnp.max(jnp.abs(out_bf - ref)))

    print("KERNEL_OK")
</pallas_src>

<mosaic_0001>
module attributes {stable_mosaic.version = 11 : i64} {
  func.func @_gemm_bias_kernel(%arg0: i32, %arg1: memref<64x256xf32, #tpu.memory_space<vmem>>, %arg2: memref<256x128xf32, #tpu.memory_space<vmem>>, %arg3: memref<1x128xf32, #tpu.memory_space<vmem>>, %arg4: memref<64x128xf32, #tpu.memory_space<vmem>>) attributes {dimension_semantics = [#tpu.dimension_semantics<parallel>], iteration_bounds = array<i64: 2>, scalar_prefetch = 0 : i64, scratch_operands = 0 : i64, tpu.core_type = #tpu.core_type<tc>, window_params = [{transform_indices = @transform_0, window_bounds = array<i64: 64, 256>}, {pipeline_mode = #tpu.pipeline_mode<synchronous>, transform_indices = @transform_1, window_bounds = array<i64: 256, 128>}, {pipeline_mode = #tpu.pipeline_mode<synchronous>, transform_indices = @transform_2, window_bounds = array<i64: 1, 128>}, {transform_indices = @transform_3, window_bounds = array<i64: 64, 128>}]} {
    %c0 = arith.constant 0 : index
    %c0_0 = arith.constant 0 : index
    %0 = vector.load %arg1[%c0, %c0_0] : memref<64x256xf32, #tpu.memory_space<vmem>>, vector<64x256xf32>
    %c0_1 = arith.constant 0 : index
    %c0_2 = arith.constant 0 : index
    %1 = vector.load %arg2[%c0_1, %c0_2] : memref<256x128xf32, #tpu.memory_space<vmem>>, vector<256x128xf32>
    %cst = arith.constant dense<0.000000e+00> : vector<64x128xf32>
    %2 = tpu.matmul %0, %1, %cst {dimension_numbers = #tpu.dot_dimension_numbers<[1], [0], [0], [1], [0, 0, 1, 1], [], []>} : vector<64x256xf32>, vector<256x128xf32>, vector<64x128xf32> -> vector<64x128xf32>
    %c0_3 = arith.constant 0 : index
    %c0_4 = arith.constant 0 : index
    %3 = vector.load %arg3[%c0_3, %c0_4] : memref<1x128xf32, #tpu.memory_space<vmem>>, vector<1x128xf32>
    %4 = vector.broadcast %3 : vector<1x128xf32> to vector<64x128xf32>
    %5 = arith.addf %2, %4 : vector<64x128xf32>
    %c0_5 = arith.constant 0 : index
    %c0_6 = arith.constant 0 : index
    %6 = vector.load %arg4[%c0_5, %c0_6] : memref<64x128xf32, #tpu.memory_space<vmem>>, vector<64x128xf32>
    tpu.vector_store %arg4[%c0_5, %c0_6], %5 {strides = array<i32>} : memref<64x128xf32, #tpu.memory_space<vmem>>, vector<64x128xf32>,
    return
  }
  func.func @transform_0(%arg0: i32) -> (i32, i32) {
    %c0_i32 = arith.constant 0 : i32
    %c0_i32_0 = arith.constant 0 : i32
    return %arg0, %c0_i32 : i32, i32
  }
  func.func @transform_1(%arg0: i32) -> (i32, i32) {
    %c0_i32 = arith.constant 0 : i32
    %c0_i32_0 = arith.constant 0 : i32
    %c0_i32_1 = arith.constant 0 : i32
    return %c0_i32, %c0_i32_0 : i32, i32
  }
  func.func @transform_2(%arg0: i32) -> (i32, i32) {
    %c0_i32 = arith.constant 0 : i32
    %c0_i32_0 = arith.constant 0 : i32
    %c0_i32_1 = arith.constant 0 : i32
    return %c0_i32, %c0_i32_0 : i32, i32
  }
  func.func @transform_3(%arg0: i32) -> (i32, i32) {
    %c0_i32 = arith.constant 0 : i32
    %c0_i32_0 = arith.constant 0 : i32
    return %arg0, %c0_i32 : i32, i32
  }
}

</mosaic_0001>

<bundles_post_ra>
// kernel: tpu_custom_call.1
= control target key start
LH: loop header
LB: loop body
LE: loop exit
PB: predicated region body
PF: predicated region fallthrough
CT: control target
= control target key end

     0   :  { %8 = vsyncpa [#allocation3], 0  ;;  %s1053_s0 = inlined_call_operand.hbm [shape: f32[128,256], index: 0, kind: input, shape index: {}]   ;;  %s1054_s1 = inlined_call_operand.hbm [shape: f32[256,128], index: 1, kind: input, shape index: {}]   ;;  %s1055_s2 = inlined_call_operand.vmem [shape: f32[1,128], index: 2, kind: input, shape index: {}]   ;;  %s1056_s3 = inlined_call_operand.hbm [shape: f32[128,128], index: 3, kind: output, shape index: {}]  }
   0x1   :  { %10 = vsyncpa [#allocation3 + $0x1], 0 }
   0x2   :  { %11 = vsyncpa [#allocation6], 0 }
   0x3   :  { %12 = vsyncpa [#allocation4], 0 }
   0x4   :  { %14 = vsyncpa [#allocation4 + $0x1], 0  ;;  %s819_s12 = smov 0   ;;  %s821_s13 = smov 0  }
   0x5   :  { %s823_s14 = smov 0   ;;  %s825_s15 = smov 0  }
   0x6 LB: > { %s840_s16 = sadd.s32 4294967295, %s788_s15   ;;  %s472_s17 = sadd.s32 4294967294, %s788_s15   ;;  %s788_s15 = sphi %s825_s15, %s1076_s15   ;;  %s784_s14 = sphi %s823_s14, %s1075_s14   ;;  %s780_s13 = sphi %s821_s13, %s1074_s13   ;;  %s776_s12 = sphi %s819_s12, %s1073_s12  }
   0x7   : > { %p40_p0 = scmp.ne.s32.totalorder %s780_s13, %s776_s12  ;;  %p1057_p1 = scmp.eq.s32.totalorder %s840_s16, 0 }
   0x8   : > { %p112_p3 = scmp.eq.s32.totalorder %s472_s17, 1  ;;  %p473_p5 = scmp.ge.s32.totalorder %s788_s15, 1 }
   0x9   : > { %p849_p4 = por %p1057_p1, %p40_p0  ;;  %p119_p7 = scmp.lt.s32.totalorder %s788_s15, 3 }
   0xa   : > { %p854_p6 = por %p112_p3, %p40_p0  ;;  %s790_s21 = smov [#allocation5]  }
   0xb   : > { %s1060_s18 = scalar_select %p849_p4, 1, 0 }
   0xc   : > { %s1061_s19 = scalar_select %p854_p6, 1, 0 }
   0xd   : > { %p859_p8 = pnand %p473_p5, %p119_p7  ;;  %s131_s22 = sshll.u32 %s790_s21, 4  ;;  %s863_s22 = int_to_ptr.vmem [resolvable:$true] %s131_s22 }
   0xe   : > { %s875_s24 = sadd.s32 1, %s788_s15   ;;  %s27_s25 = sadd.s32 1, %s784_s14 }
   0xf   : > { %s1062_s20 = scalar_select %p859_p8, 1, 0 }
  0x10   : > { %p605_p9 = pneg %p859_p8  ;;  %s24_s26 = ssub.s32 %s788_s15, %s875_s24 }
  0x11   : > { %s660_s29 = scalar_lea.hbm %s1054_s1, 4096 }
  0x12   : > { %p870_p11 = pnand %p605_p9, %p1057_p1  ;;  %p661_p12 = scmp.ne.s32.totalorder %s1054_s1, %s660_s29 }
  0x13   : > { %p667_p5 = scmp.lt.u32.totalorder %s660_s29, %s1054_s1 }
  0x14   : > { %p662_p13 = pneg %p870_p11 }
  0x16   : > { %p663_p0 = pnand %p662_p13, %p661_p12 }
  0x18   : > { %p664_p3 = pneg %p663_p0 }
  0x1a   : > { %p669_p7 = pnand %p667_p5, %p664_p3 }
  0x1c   : > { %672 = shalt.err (!%p669_p7)
}
  0x1d   : > { %s673_s7 = scalar_lea.vmem %s863_s22, 4096  ;;  %p681_p2 = scmp.lt.s32.totalorder %s863_s22, %s863_s22 }
  0x1e   : > { %p674_p9 = scmp.ne.s32.totalorder %s863_s22, %s673_s7  ;;  %p682_p6 = scmp.lt.s32.totalorder %s673_s7, %s673_s7 }
  0x20   : > { %p676_p10 = pnand %p674_p9, %p662_p13  ;;  %p683_p4 = por %p682_p6, %p681_p2 }
  0x22   : > { %p677_p1 = pneg %p676_p10 }
  0x24   : > { %p684_p8 = pnand %p683_p4, %p677_p1 }
  0x26   : > { %687 = shalt.err (!%p684_p8)
}
  0x27   : > { %s791_s8 = smov 128   ;;  %s792_s9 = smov 8  }
  0x28   : > { %608 = dma.hbm_to_vmem [thread:$0]  (!%p870_p11), %s1054_s1, 4096, %s863_s22, [#allocation6], %s791_s8, %s791_s8, %s792_s9  }
  0x29   : > { %p25_p2 = scmp.eq.s32.totalorder %s24_s26, 0  ;;  %p34_p1 = scmp.ne.s32.totalorder %s784_s14, %s780_s13 }
  0x2a   : > { %p35_p4 = scmp.eq.s32.totalorder %s788_s15, 0  ;;  %p618_p6 = scmp.lt.s32.totalorder %s788_s15, 2 }
  0x2b   : > { %s906_s17 = scalar_select %p25_p2, %s784_s14, %s27_s25  }
  0x2c   : > { %p36_p8 = por %p35_p4, %p34_p1  ;;  %p1064_p10 = scmp.eq.s32.totalorder %s840_s16, 1 }
  0x2d   : > { %s148_s27 = sand.u32 1, %s784_s14   ;;  %s491_s28 = sshll.u32 %s788_s15, 11 }
  0x2e   : > { %p910_p12 = por %p1064_p10, %p34_p1  ;;  %s476_s29 = sshll.u32 %s148_s27, 7 }
  0x2f   : > { %s919_s4 = scalar_lea.hbm %s1053_s0, %s491_s28  ;;  %s152_s22 = scalar_lea.vmem [#allocation2], %s476_s29 }
  0x30   : > { %s160_s25 = sshll.u32 %s152_s22, 4  ;;  %p921_p11 = pnand %p618_p6, %p36_p8  ;;  %s925_s25 = int_to_ptr.vmem [resolvable:$true] %s160_s25 }
  0x31   : > { %s927_s5 = scalar_lea.sflag [#allocation3], %s148_s27  ;;  %s688_s6 = scalar_lea.hbm %s919_s4, 2048 }
  0x32   : > { %p689_p13 = scmp.ne.s32.totalorder %s919_s4, %s688_s6  ;;  %p690_p0 = pneg %p921_p11 }
  0x33   : > { %s693_s9 = scalar_lea.hbm %s1053_s0, 4096  ;;  %p694_p7 = scmp.lt.u32.totalorder %s919_s4, %s1053_s0 }
  0x34   : > { %p691_p3 = pnand %p690_p0, %p689_p13  ;;  %p695_p9 = scmp.lt.u32.totalorder %s693_s9, %s688_s6 }
  0x35   : > { %p697_p1 = scmp.lt.u32.totalorder %s688_s6, %s919_s4 }
  0x36   : > { %p692_p5 = pneg %p691_p3  ;;  %p696_p2 = por %p695_p9, %p694_p7 }
  0x38   : > { %p698_p4 = por %p697_p1, %p696_p2 }
  0x3a   : > { %p699_p6 = pnand %p698_p4, %p692_p5 }
  0x3c   : > { %702 = shalt.err (!%p699_p6)
}
  0x3d   : > { %s703_s27 = scalar_lea.vmem %s925_s25, 2048  ;;  %s793_s28 = smov [#allocation2]  }
  0x3e   : > { %p704_p8 = scmp.ne.s32.totalorder %s925_s25, %s703_s27  ;;  %s708_s29 = sshll.u32 %s793_s28, 4  ;;  %s709_s29 = int_to_ptr.vmem [resolvable:$false] %s708_s29 }
  0x3f   : > { %s710_s23 = scalar_lea.vmem %s709_s29, 4096  ;;  %p711_p3 = scmp.lt.s32.totalorder %s925_s25, %s709_s29 }
  0x40   : > { %p706_p10 = pnand %p704_p8, %p690_p0  ;;  %p712_p7 = scmp.lt.s32.totalorder %s710_s23, %s703_s27 }
  0x42   : > { %p707_p13 = pneg %p706_p10  ;;  %p713_p9 = por %p712_p7, %p711_p3 }
  0x44   : > { %p714_p2 = pnand %p713_p9, %p707_p13 }
  0x46   : > { %717 = shalt.err (!%p714_p2)
}
  0x47   : > { %s794_s30 = smov 256   ;;  %s795_s22 = smov 16  }
  0x48   : > { %612 = dma.hbm_to_vmem [thread:$0]  (!%p921_p11), %s919_s4, 2048, %s925_s25, %s927_s5, %s794_s30, %s794_s30, %s795_s22  }
  0x49   : > { %p1067_p0 = scmp.ne.s32.totalorder %s1062_s20, 0 }
  0x4a   : > { %s958_s6 = sand.u32 (!%p1067_p0), 1, %s780_s13   ;;  %p1068_p5 = scmp.ne.s32.totalorder (!%p1067_p0), %s1060_s18, 0 }
  0x4b   : > { %172 = sbr.rel (%p1067_p0) target bundleno = 365 (0x16d), region = 32  ;;  %s481_s7 = sshll.u32 (!%p1067_p0), %s958_s6, 7 }
  0x4c   : > { %s175_s8 = scalar_lea.sflag (!%p1067_p0), [#allocation3], %s958_s6  ;;  %s962_s9 = scalar_lea.vmem (!%p1067_p0), [#allocation2], %s481_s7 }
  0x52   : > { %763 = dma.done.wait (%p1068_p5), %s175_s8, 2048  }
  0x53   : > { %765 = vsyncadd (%p1068_p5), %s175_s8, 4294965248  ;;  %p1069_p11 = scmp.eq.s32.totalorder %s840_s16, 0 }
  0x55   : > { %767 = dma.done.wait (%p1069_p11), [#allocation6], 4096   ;;  %p1070_p1 = pmov %p1069_p11 }
  0x56   : > { %v239_v0 = vld [vmem:[#allocation5 + $0x80] sm:$0xff]  ;;  %v240_v1 = vld [vmem:[#allocation5 + $0x88] sm:$0xff]  ;;  %v241_v5 = vld [vmem:[#allocation5 + $0x90] sm:$0xff]  ;;  %s483_s18 = sshll.u32 %s958_s6, 6  ;;  %s492_s5 = sshll.u32 %s840_s16, 10 }
  0x57   : > { %769 = vsyncadd (%p1070_p1), [#allocation6], 4294963200  ;;  %v223_v2 = vld [vmem:[#allocation5] sm:$0xff]  ;;  %v549_v3 = vpack.c.bf16 %v240_v1, %v239_v0  ;;  %v224_v4 = vld [vmem:[#allocation5 + $0x8] sm:$0xff]  ;;  %s992_s25 = scalar_lea.vmem [#allocation7], %s483_s18  ;;  %s1007_s27 = scalar_lea.hbm %s1056_s3, %s492_s5 }
  0x58   : > { %v242_v6 = vld [vmem:[#allocation5 + $0x98] sm:$0xff]  ;;  %v551_v7 = vpack.c.bf16 %v224_v4, %v223_v2  ;;  %v225_v9 = vld [vmem:[#allocation5 + $0x10] sm:$0xff]  ;;  %v243_v11 = vld [vmem:[#allocation5 + $0xa0] sm:$0xff]  ;;  %s389_s26 = sshll.u32 %s992_s25, 4  ;;  %s376_s16 = scalar_lea.sflag [#allocation4], %s958_s6  ;;  %s1000_s26 = int_to_ptr.vmem [resolvable:$true] %s389_s26 }
  0x59   : > { %v553_v8 = vpack.c.bf16 %v242_v6, %v241_v5  ;;  %v226_v10 = vld [vmem:[#allocation5 + $0x18] sm:$0xff]  ;;  %550 = vmatprep.subr.bf16.mxu0 %v549_v3  ;;  %581 = vmatprep.subr.bf16.mxu1 %v549_v3  ;;  %v244_v12 = vld [vmem:[#allocation5 + $0xa8] sm:$0xff]  ;;  %v227_v15 = vld [vmem:[#allocation5 + $0x20] sm:$0xff]  ;;  %s718_s28 = scalar_lea.vmem %s1000_s26, 1024  ;;  %s796_s29 = smov [#allocation7]  }
  0x5a   : > { %552 = vmatpush3.bf16.msra.mxu0 %v551_v7  ;;  %589 = vmatpush3.bf16.msra.mxu1 %v551_v7  ;;  %v555_v13 = vpack.c.bf16 %v226_v10, %v225_v9  ;;  %v557_v14 = vpack.c.bf16 %v244_v12, %v243_v11  ;;  %v228_v16 = vld [vmem:[#allocation5 + $0x28] sm:$0xff]  ;;  %v245_v17 = vld [vmem:[#allocation5 + $0xb0] sm:$0xff]  ;;  %v246_v18 = vld [vmem:[#allocation5 + $0xb8] sm:$0xff]  ;;  %p719_p4 = scmp.ne.s32.totalorder %s1000_s26, %s718_s28  ;;  %s722_s23 = sshll.u32 %s796_s29, 4  ;;  %s723_s23 = int_to_ptr.vmem [resolvable:$false] %s722_s23 }
  0x5b   : > { %554 = vmatprep.subr.bf16.mxu0 %v553_v8  ;;  %582 = vmatprep.subr.bf16.mxu1 %v553_v8  ;;  %v559_v19 = vpack.c.bf16 %v228_v16, %v227_v15  ;;  %v561_v20 = vpack.c.bf16 %v246_v18, %v245_v17  ;;  %v229_v21 = vld [vmem:[#allocation5 + $0x30] sm:$0xff]  ;;  %v230_v22 = vld [vmem:[#allocation5 + $0x38] sm:$0xff]  ;;  %v247_v23 = vld [vmem:[#allocation5 + $0xc0] sm:$0xff]  ;;  %s724_s30 = scalar_lea.vmem %s723_s23, 2048  ;;  %p725_p10 = scmp.lt.s32.totalorder %s1000_s26, %s723_s23 }
  0x5c   : > { %v248_v24 = vld [vmem:[#allocation5 + $0xc8] sm:$0xff]  ;;  %v563_v27 = vpack.c.bf16 %v230_v22, %v229_v21  ;;  %v231_v29 = vld [vmem:[#allocation5 + $0x40] sm:$0xff]  ;;  %v249_v31 = vld [vmem:[#allocation5 + $0xd0] sm:$0xff]  ;;  %p720_p6 = pnand %p719_p4, %p910_p12  ;;  %p726_p13 = scmp.lt.s32.totalorder %s724_s30, %s718_s28 }
  0x5d   : > { %v208_v25 = vld [vmem:[%s962_s9 + $0x8] sm:$0xff]  ;;  %v565_v28 = vpack.c.bf16 %v248_v24, %v247_v23  ;;  %v250_v32 = vld [vmem:[#allocation5 + $0xd8] sm:$0xff]  ;;  %v233_v35 = vld [vmem:[#allocation5 + $0x50] sm:$0xff] }
  0x5e   : > { %556 = vmatpush3.bf16.msra.mxu0 %v555_v13  ;;  %590 = vmatpush3.bf16.msra.mxu1 %v555_v13  ;;  %v216_v26 = vld [vmem:[%s962_s9 + $0x48] sm:$0xff]  ;;  %v569_v34 = vpack.c.bf16 %v250_v32, %v249_v31  ;;  %v234_v36 = vld [vmem:[#allocation5 + $0x58] sm:$0xff]  ;;  %v251_v37 = vld [vmem:[#allocation5 + $0xe0] sm:$0xff]  ;;  %p721_p8 = pneg %p720_p6  ;;  %p727_p3 = por %p726_p13, %p725_p10 }
  0x5f   : > { %558 = vmatprep.subr.bf16.mxu0 %v557_v14  ;;  %583 = vmatprep.subr.bf16.mxu1 %v557_v14  ;;  %v232_v30 = vld [vmem:[#allocation5 + $0x48] sm:$0xff]  ;;  %v571_v39 = vpack.c.bf16 %v234_v36, %v233_v35  ;;  %v235_v41 = vld [vmem:[#allocation5 + $0x60] sm:$0xff]  ;;  %v253_v43 = vld [vmem:[#allocation5 + $0xf0] sm:$0xff] }
  0x60   : > { %326 = vmatprep.mubr.f32.mxu0 %v208_v25  ;;  %346 = vmatprep.mubr.f32.mxu1 %v216_v26  ;;  %v567_v33 = vpack.c.bf16 %v232_v30, %v231_v29  ;;  %v252_v38 = vld [vmem:[#allocation5 + $0xe8] sm:$0xff]  ;;  %v254_v44 = vld [vmem:[#allocation5 + $0xf8] sm:$0xff]  ;;  %v237_v47 = vld [vmem:[#allocation5 + $0x70] sm:$0xff]  ;;  %p728_p7 = pnand %p727_p3, %p721_p8 }
  0x61   : > { %v573_v40 = vpack.c.bf16 %v252_v38, %v251_v37  ;;  %v236_v42 = vld [vmem:[#allocation5 + $0x68] sm:$0xff]  ;;  %v577_v46 = vpack.c.bf16 %v254_v44, %v253_v43  ;;  %v238_v48 = vld [vmem:[#allocation5 + $0x78] sm:$0xff]  ;;  %v207_v50 = vld [vmem:[%s962_s9] sm:$0xff] }
  0x62   : > { %560 = vmatpush3.bf16.msra.mxu0 %v559_v19  ;;  %591 = vmatpush3.bf16.msra.mxu1 %v559_v19  ;;  %v575_v45 = vpack.c.bf16 %v236_v42, %v235_v41  ;;  %v579_v49 = vpack.c.bf16 %v238_v48, %v237_v47  ;;  %v215_v51 = vld [vmem:[%s962_s9 + $0x40] sm:$0xff]  ;;  %v210_v52 = vld [vmem:[%s962_s9 + $0x18] sm:$0xff]  ;;  %v209_v54 = vld [vmem:[%s962_s9 + $0x10] sm:$0xff] }
  0x63   : > { %562 = vmatprep.subr.bf16.mxu0 %v561_v20  ;;  %584 = vmatprep.subr.bf16.mxu1 %v561_v20  ;;  %v218_v53 = vld [vmem:[%s962_s9 + $0x58] sm:$0xff]  ;;  %v217_v55 = vld [vmem:[%s962_s9 + $0x50] sm:$0xff]  ;;  %v212_v56 = vld [vmem:[%s962_s9 + $0x28] sm:$0xff] }
  0x64   : > { %v220_v57 = vld [vmem:[%s962_s9 + $0x68] sm:$0xff]  ;;  %v211_v58 = vld [vmem:[%s962_s9 + $0x20] sm:$0xff]  ;;  %v214_v60 = vld [vmem:[%s962_s9 + $0x38] sm:$0xff] }
  0x65   : > { %v219_v59 = vld [vmem:[%s962_s9 + $0x60] sm:$0xff]  ;;  %v222_v61 = vld [vmem:[%s962_s9 + $0x78] sm:$0xff]  ;;  %v213_v62 = vld [vmem:[%s962_s9 + $0x30] sm:$0xff] }
  0x66   : > { %564 = vmatpush3.bf16.msra.mxu0 %v563_v27  ;;  %592 = vmatpush3.bf16.msra.mxu1 %v563_v27  ;;  %v221_v63 = vld [vmem:[%s962_s9 + $0x70] sm:$0xff]  ;;  %v484_v2 = vld [vmem:[%s1055_s2] ss:$0 sm:$0xff] }
  0x67   : > { %566 = vmatprep.subr.bf16.mxu0 %v565_v28  ;;  %585 = vmatprep.subr.bf16.mxu1 %v565_v28 }
  0x6a   : > { %568 = vmatpush3.bf16.msra.mxu0 %v567_v33  ;;  %593 = vmatpush3.bf16.msra.mxu1 %v567_v33 }
  0x6b   : > { %570 = vmatprep.subr.bf16.mxu0 %v569_v34  ;;  %586 = vmatprep.subr.bf16.mxu1 %v569_v34 }
  0x6e   : > { %572 = vmatpush3.bf16.msra.mxu0 %v571_v39  ;;  %594 = vmatpush3.bf16.msra.mxu1 %v571_v39 }
  0x6f   : > { %574 = vmatprep.subr.bf16.mxu0 %v573_v40  ;;  %587 = vmatprep.subr.bf16.mxu1 %v573_v40 }
  0x72   : > { %576 = vmatpush3.bf16.msra.mxu0 %v575_v45  ;;  %595 = vmatpush3.bf16.msra.mxu1 %v575_v45 }
  0x73   : > { %578 = vmatprep.subr.bf16.mxu0 %v577_v46  ;;  %588 = vmatprep.subr.bf16.mxu1 %v577_v46 }
  0x76   : > { %580 = vmatpush3.bf16.msra.mxu0 %v579_v49  ;;  %596 = vmatpush3.bf16.msra.mxu1 %v579_v49 }
  0x79   : > { %327 = vmatmul.mubr.f32.vlgmr.msra.gmra.mrb[0].mxu0 %v207_v50  ;;  %347 = vmatmul.mubr.f32.vlgmr.msra.gmra.mrb[0].mxu1 %v215_v51 }
  0x7a   : > { %331 = vmatprep.mubr.f32.mxu0 %v210_v52  ;;  %351 = vmatprep.mubr.f32.mxu1 %v218_v53 }
  0x7d   : > { %332 = vmatmul.mubr.f32.gmra.mrb[2].mxu0 %v209_v54  ;;  %352 = vmatmul.mubr.f32.gmra.mrb[2].mxu1 %v217_v55 }
  0x7e   : > { %336 = vmatprep.mubr.f32.mxu0 %v212_v56  ;;  %356 = vmatprep.mubr.f32.mxu1 %v220_v57 }
  0x81   : > { %337 = vmatmul.mubr.f32.gmra.mrb[4].mxu0 %v211_v58  ;;  %357 = vmatmul.mubr.f32.gmra.mrb[4].mxu1 %v219_v59 }
  0x82   : > { %341 = vmatprep.mubr.f32.mxu0 %v214_v60  ;;  %361 = vmatprep.mubr.f32.mxu1 %v222_v61 }
  0x85   : > { %342 = vmatmul.mubr.f32.gmra.mrb[6].mxu0 %v213_v62  ;;  %362 = vmatmul.mubr.f32.gmra.mrb[6].mxu1 %v221_v63 }
 0x14c   : > { %v525_v0 = vpop.f32.mrb[0].mxu0  ;;  %v537_v1 = vpop.f32.mrb[0].mxu1 }
 0x14d   : > { %v526_v3 = vpop.f32.mrb[1].mxu0  ;;  %v538_v4 = vpop.f32.mrb[1].mxu1 }
 0x14e   : > { %v527_v5 = vadd.f32 %v526_v3, %v525_v0  ;;  %v539_v6 = vadd.f32 %v538_v4, %v537_v1 }
 0x150   : > { %v329_v7 = vadd.f32 %v527_v5, %v484_v2  ;;  %v349_v8 = vadd.f32 %v539_v6, %v484_v2  ;;  %v528_v9 = vpop.f32.mrb[2].mxu0  ;;  %v540_v10 = vpop.f32.mrb[2].mxu1 }
 0x151   : > { %v529_v11 = vpop.f32.mrb[3].mxu0  ;;  %v541_v12 = vpop.f32.mrb[3].mxu1 }
 0x152   : > { %367 = vst [vmem:[%s992_s25] sm:$0xff] %v329_v7  ;;  %371 = vst [vmem:[%s992_s25 + $0x20] sm:$0xff] %v349_v8  ;;  %v530_v13 = vadd.f32 %v529_v11, %v528_v9  ;;  %v542_v14 = vadd.f32 %v541_v12, %v540_v10 }
 0x154   : > { %v334_v15 = vadd.f32 %v530_v13, %v484_v2  ;;  %v354_v16 = vadd.f32 %v542_v14, %v484_v2  ;;  %v531_v17 = vpop.f32.mrb[4].mxu0  ;;  %v543_v18 = vpop.f32.mrb[4].mxu1 }
 0x155   : > { %v532_v19 = vpop.f32.mrb[5].mxu0  ;;  %v544_v20 = vpop.f32.mrb[5].mxu1 }
 0x156   : > { %368 = vst [vmem:[%s992_s25 + $0x8] sm:$0xff] %v334_v15  ;;  %372 = vst [vmem:[%s992_s25 + $0x28] sm:$0xff] %v354_v16  ;;  %v533_v21 = vadd.f32 %v532_v19, %v531_v17  ;;  %v545_v22 = vadd.f32 %v544_v20, %v543_v18 }
 0x158   : > { %v339_v23 = vadd.f32 %v533_v21, %v484_v2  ;;  %v359_v24 = vadd.f32 %v545_v22, %v484_v2  ;;  %v534_v25 = vpop.f32.mrb[6].mxu0  ;;  %v546_v26 = vpop.f32.mrb[6].mxu1 }
 0x159   : > { %v535_v27 = vpop.f32.mrb[7].mxu0  ;;  %v547_v28 = vpop.f32.mrb[7].mxu1 }
 0x15a   : > { %369 = vst [vmem:[%s992_s25 + $0x10] sm:$0xff] %v339_v23  ;;  %373 = vst [vmem:[%s992_s25 + $0x30] sm:$0xff] %v359_v24  ;;  %v536_v29 = vadd.f32 %v535_v27, %v534_v25  ;;  %v548_v30 = vadd.f32 %v547_v28, %v546_v26 }
 0x15c   : > { %v344_v31 = vadd.f32 %v536_v29, %v484_v2  ;;  %v364_v32 = vadd.f32 %v548_v30, %v484_v2 }
 0x15e   : > { %370 = vst [vmem:[%s992_s25 + $0x18] sm:$0xff] %v344_v31  ;;  %374 = vst [vmem:[%s992_s25 + $0x38] sm:$0xff] %v364_v32 }
 0x15f   : > { %731 = shalt.err (!%p728_p7)
}
 0x160   : > { %s732_s22 = scalar_lea.hbm %s1007_s27, 1024  ;;  %s736_s9 = scalar_lea.hbm %s1056_s3, 2048 }
 0x161   : > { %p733_p9 = scmp.ne.s32.totalorder %s1007_s27, %s732_s22  ;;  %p737_p5 = scmp.lt.u32.totalorder %s1007_s27, %s1056_s3 }
 0x162   : > { %p738_p11 = scmp.lt.u32.totalorder %s736_s9, %s732_s22  ;;  %p740_p4 = scmp.lt.u32.totalorder %s732_s22, %s1007_s27 }
 0x163   : > { %p734_p2 = pnand %p733_p9, %p910_p12 }
 0x164   : > { %p739_p1 = por %p738_p11, %p737_p5 }
 0x165   : > { %p735_p0 = pneg %p734_p2 }
 0x166   : > { %p741_p6 = por %p740_p4, %p739_p1 }
 0x168   : > { %p742_p8 = pnand %p741_p6, %p735_p0 }
 0x16a   : > { %745 = shalt.err (!%p742_p8)
}
 0x16b   : > { %s797_s4 = smov 128   ;;  %s798_s25 = smov 8  }
 0x16c   : > { %603 = dma.vmem_to_hbm [thread:$0]  (%p910_p12), %s1000_s26, 1024, %s1007_s27, %s376_s16, %s797_s4, %s797_s4, %s798_s25  }
 0x16d PF: > { %s404_s5 = sand.u32 1, %s776_s12   ;;  %p1071_p10 = scmp.ne.s32.totalorder %s1061_s19, 0 }
 0x16e   : > { %p1072_p13 = scmp.ge.s32.totalorder %s788_s15, 2  ;;  %s405_s10 = scalar_lea.sflag [#allocation4], %s404_s5 }
 0x170   : > { %p614_p3 = pnand %p1072_p13, %p1071_p10 }
 0x172   : > { %771 = dma.done.wait (!%p614_p3), %s405_s10, 1024  }
 0x173   : > { %773 = vsyncadd (!%p614_p3), %s405_s10, 4294966272  ;;  %p17_p7 = scmp.ge.s32.totalorder %s875_s24, 4   ;;  %s1073_s12 = smov %s780_s13 }
 0x174   : > { %s1074_s13 = smov %s784_s14  ;;  %s1075_s14 = smov %s906_s17 }
 0x175   : > { %s1076_s15 = smov %s875_s24  ;;  %19 = sbr.rel (!%p17_p7) target bundleno = 6 (0x6), region = 81 }
 0x17c   :  { %410 = vsyncpa [#allocation3], 1 }
 0x17d   :  { %412 = vsyncpa [#allocation3 + $0x1], 1 }
 0x17e   :  { %413 = vsyncpa [#allocation6], 1 }
 0x17f   :  { %414 = vsyncpa [#allocation4], 1 }
 0x180   :  { %416 = vsyncpa [#allocation4 + $0x1], 1 }

</bundles_post_ra>
